<compile_context>
chip_gen: v7x
topology: tpu7x:2x2x1
jax: 0.10.0
libtpu: 0.0.40
codegen_flags: <defaults>
</compile_context>

<pallas_src>
import jax
import jax.numpy as jnp
from jax.experimental import pallas as pl
from jax.experimental.pallas import tpu as pltpu


def _round_up(n, m):
    return (n + m - 1) // m * m


def mlp_kernel(x_ref, w1_ref, b1_ref, w2_ref, b2_ref, w3_ref, b3_ref, o_ref):
    """Fused 3-layer MLP: (linear + ReLU) x2, then linear."""
    x = x_ref[...]
    in_f = x.shape[1]  # static at trace time

    if in_f <= 8:
        # Tiny-K first layer: VPU broadcast multiply-adds, no MXU push/pop latency.
        h1 = b1_ref[...]  # (1, h) broadcasts against (block_b, h)
        for k in range(in_f):
            h1 = h1 + x[:, k:k + 1] * w1_ref[k:k + 1, :]
    else:
        h1 = jnp.dot(x, w1_ref[...], preferred_element_type=jnp.float32) + b1_ref[...]
    h1 = jnp.maximum(h1, 0.0)

    h2 = jnp.dot(h1, w2_ref[...], preferred_element_type=jnp.float32) + b2_ref[...]
    h2 = jnp.maximum(h2, 0.0)

    o_ref[...] = (
        jnp.dot(h2, w3_ref[...], preferred_element_type=jnp.float32) + b3_ref[...]
    ).astype(o_ref.dtype)


def _choose_block_b(B, max_block_b=2048):
    """Batch tile size: single step for tiny B, >=2 steps otherwise (v7x megacore)."""
    if B < 512:
        return _round_up(B, 8)           # tiny: one step, pay pipeline overhead once
    if B <= 2 * max_block_b:
        return _round_up((B + 1) // 2, 8)  # medium: exactly 2 steps -> both TCs busy
    return max_block_b                     # large: big tiles amortize per-step cost


@jax.jit
def moon_model_forward(x, w1, b1, w2, b2, w3, b3):
    """Forward pass of MoonModel. Weights are (in, out); biases are (1, out)."""
    B, in_f = x.shape
    h = w1.shape[1]
    out_f = w3.shape[1]

    block_b = _choose_block_b(B)
    B_pad = _round_up(B, block_b)
    if B_pad != B:
        x = jnp.pad(x, ((0, B_pad - B), (0, 0)))

    full2 = lambda shape: pl.BlockSpec(shape, lambda i: (0, 0))

    out = pl.pallas_call(
        mlp_kernel,
        out_shape=jax.ShapeDtypeStruct((B_pad, out_f), jnp.float32),
        grid_spec=pltpu.PrefetchScalarGridSpec(
            num_scalar_prefetch=0,
            grid=(B_pad // block_b,),
            in_specs=[
                pl.BlockSpec((block_b, in_f), lambda i: (i, 0)),  # batch tile
                full2((in_f, h)),   # weights/biases: loop-invariant full blocks
                full2((1, h)),
                full2((h, h)),
                full2((1, h)),
                full2((h, out_f)),
                full2((1, out_f)),
            ],
            out_specs=pl.BlockSpec((block_b, out_f), lambda i: (i, 0)),
        ),
        compiler_params=pltpu.CompilerParams(
            dimension_semantics=("parallel",),
        ),
    )(x, w1, b1, w2, b2, w3, b3)

    return out[:B] if B_pad != B else out


def init_linear_params(key, in_features, out_features):
    """PyTorch-style nn.Linear init U(-1/sqrt(in), 1/sqrt(in)).

    Returns weight already transposed to (in, out) for the kernel layout."""
    kw, kb = jax.random.split(key)
    bound = 1.0 / jnp.sqrt(jnp.float32(in_features))
    w = jax.random.uniform(
        kw, (in_features, out_features), jnp.float32, minval=-bound, maxval=bound
    )
    b = jax.random.uniform(
        kb, (1, out_features), jnp.float32, minval=-bound, maxval=bound
    )
    return w, b


def reference_forward(x, w1, b1, w2, b2, w3, b3):
    h1 = jnp.maximum(x @ w1 + b1, 0.0)
    h2 = jnp.maximum(h1 @ w2 + b2, 0.0)
    return h2 @ w3 + b3


if __name__ == "__main__":
    # make_moons-style sizes: 2 input features, 2 output classes, 32 hidden units.
    input_features = 2
    output_features = 2
    hidden_units = 32
    batch = 128  # small batch -> single grid step

    key = jax.random.PRNGKey(0)
    kx, k1, k2, k3 = jax.random.split(key, 4)

    x = jax.random.normal(kx, (batch, input_features), jnp.float32)
    w1, b1 = init_linear_params(k1, input_features, hidden_units)
    w2, b2 = init_linear_params(k2, hidden_units, hidden_units)
    w3, b3 = init_linear_params(k3, hidden_units, output_features)

    out = moon_model_forward(x, w1, b1, w2, b2, w3, b3)
    out = jax.block_until_ready(out)

    ref = reference_forward(x, w1, b1, w2, b2, w3, b3)
    assert out.shape == (batch, output_features)
    assert jnp.allclose(out, ref, atol=1e-5, rtol=1e-5), "mismatch vs JAX reference"

    print("KERNEL_OK")
</pallas_src>

<mosaic_0001>
module attributes {stable_mosaic.version = 11 : i64} {
  func.func @mlp_kernel(%arg0: i32, %arg1: memref<128x2xf32, #tpu.memory_space<vmem>>, %arg2: memref<2x32xf32, #tpu.memory_space<vmem>>, %arg3: memref<1x32xf32, #tpu.memory_space<vmem>>, %arg4: memref<32x32xf32, #tpu.memory_space<vmem>>, %arg5: memref<1x32xf32, #tpu.memory_space<vmem>>, %arg6: memref<32x2xf32, #tpu.memory_space<vmem>>, %arg7: memref<1x2xf32, #tpu.memory_space<vmem>>, %arg8: memref<128x2xf32, #tpu.memory_space<vmem>>) attributes {dimension_semantics = [#tpu.dimension_semantics<parallel>], iteration_bounds = array<i64: 1>, scalar_prefetch = 0 : i64, scratch_operands = 0 : i64, tpu.core_type = #tpu.core_type<tc>, window_params = [{transform_indices = @transform_0, window_bounds = array<i64: 128, 2>}, {pipeline_mode = #tpu.pipeline_mode<synchronous>, transform_indices = @transform_1, window_bounds = array<i64: 2, 32>}, {pipeline_mode = #tpu.pipeline_mode<synchronous>, transform_indices = @transform_2, window_bounds = array<i64: 1, 32>}, {pipeline_mode = #tpu.pipeline_mode<synchronous>, transform_indices = @transform_3, window_bounds = array<i64: 32, 32>}, {pipeline_mode = #tpu.pipeline_mode<synchronous>, transform_indices = @transform_4, window_bounds = array<i64: 1, 32>}, {pipeline_mode = #tpu.pipeline_mode<synchronous>, transform_indices = @transform_5, window_bounds = array<i64: 32, 2>}, {pipeline_mode = #tpu.pipeline_mode<synchronous>, transform_indices = @transform_6, window_bounds = array<i64: 1, 2>}, {transform_indices = @transform_7, window_bounds = array<i64: 128, 2>}]} {
    %c0 = arith.constant 0 : index
    %c0_0 = arith.constant 0 : index
    %0 = vector.load %arg1[%c0, %c0_0] : memref<128x2xf32, #tpu.memory_space<vmem>>, vector<128x2xf32>
    %c0_1 = arith.constant 0 : index
    %c0_2 = arith.constant 0 : index
    %1 = vector.load %arg3[%c0_1, %c0_2] : memref<1x32xf32, #tpu.memory_space<vmem>>, vector<1x32xf32>
    %2 = vector.extract_strided_slice %0 {offsets = [0, 0], sizes = [128, 1], strides = [1, 1]} : vector<128x2xf32> to vector<128x1xf32>
    %c0_3 = arith.constant 0 : index
    %c0_4 = arith.constant 0 : index
    %3 = vector.load %arg2[%c0_3, %c0_4] : memref<2x32xf32, #tpu.memory_space<vmem>>, vector<1x32xf32>
    %4 = vector.broadcast %2 : vector<128x1xf32> to vector<128x32xf32>
    %5 = vector.broadcast %3 : vector<1x32xf32> to vector<128x32xf32>
    %6 = arith.mulf %4, %5 : vector<128x32xf32>
    %7 = vector.broadcast %1 : vector<1x32xf32> to vector<128x32xf32>
    %8 = arith.addf %7, %6 : vector<128x32xf32>
    %9 = vector.extract_strided_slice %0 {offsets = [0, 1], sizes = [128, 1], strides = [1, 1]} : vector<128x2xf32> to vector<128x1xf32>
    %c1 = arith.constant 1 : index
    %c0_5 = arith.constant 0 : index
    %10 = vector.load %arg2[%c1, %c0_5] : memref<2x32xf32, #tpu.memory_space<vmem>>, vector<1x32xf32>
    %11 = vector.broadcast %9 : vector<128x1xf32> to vector<128x32xf32>
    %12 = vector.broadcast %10 : vector<1x32xf32> to vector<128x32xf32>
    %13 = arith.mulf %11, %12 : vector<128x32xf32>
    %14 = arith.addf %8, %13 : vector<128x32xf32>
    %cst = arith.constant 0.000000e+00 : f32
    %15 = vector.broadcast %cst : f32 to vector<128x32xf32>
    %16 = arith.maximumf %14, %15 : vector<128x32xf32>
    %c0_6 = arith.constant 0 : index
    %c0_7 = arith.constant 0 : index
    %17 = vector.load %arg4[%c0_6, %c0_7] : memref<32x32xf32, #tpu.memory_space<vmem>>, vector<32x32xf32>
    %cst_8 = arith.constant dense<0.000000e+00> : vector<128x32xf32>
    %18 = tpu.matmul %16, %17, %cst_8 {dimension_numbers = #tpu.dot_dimension_numbers<[1], [0], [0], [1], [0, 0, 1, 1], [], []>} : vector<128x32xf32>, vector<32x32xf32>, vector<128x32xf32> -> vector<128x32xf32>
    %c0_9 = arith.constant 0 : index
    %c0_10 = arith.constant 0 : index
    %19 = vector.load %arg5[%c0_9, %c0_10] : memref<1x32xf32, #tpu.memory_space<vmem>>, vector<1x32xf32>
    %20 = vector.broadcast %19 : vector<1x32xf32> to vector<128x32xf32>
    %21 = arith.addf %18, %20 : vector<128x32xf32>
    %cst_11 = arith.constant 0.000000e+00 : f32
    %22 = vector.broadcast %cst_11 : f32 to vector<128x32xf32>
    %23 = arith.maximumf %21, %22 : vector<128x32xf32>
    %c0_12 = arith.constant 0 : index
    %c0_13 = arith.constant 0 : index
    %24 = vector.load %arg6[%c0_12, %c0_13] : memref<32x2xf32, #tpu.memory_space<vmem>>, vector<32x2xf32>
    %cst_14 = arith.constant dense<0.000000e+00> : vector<128x2xf32>
    %25 = tpu.matmul %23, %24, %cst_14 {dimension_numbers = #tpu.dot_dimension_numbers<[1], [0], [0], [1], [0, 0, 1, 1], [], []>} : vector<128x32xf32>, vector<32x2xf32>, vector<128x2xf32> -> vector<128x2xf32>
    %c0_15 = arith.constant 0 : index
    %c0_16 = arith.constant 0 : index
    %26 = vector.load %arg7[%c0_15, %c0_16] : memref<1x2xf32, #tpu.memory_space<vmem>>, vector<1x2xf32>
    %27 = vector.broadcast %26 : vector<1x2xf32> to vector<128x2xf32>
    %28 = arith.addf %25, %27 : vector<128x2xf32>
    %c0_17 = arith.constant 0 : index
    %c0_18 = arith.constant 0 : index
    %29 = vector.load %arg8[%c0_17, %c0_18] : memref<128x2xf32, #tpu.memory_space<vmem>>, vector<128x2xf32>
    tpu.vector_store %arg8[%c0_17, %c0_18], %28 {strides = array<i32>} : memref<128x2xf32, #tpu.memory_space<vmem>>, vector<128x2xf32>,
    return
  }
  func.func @transform_0(%arg0: i32) -> (i32, i32) {
    %c0_i32 = arith.constant 0 : i32
    %c0_i32_0 = arith.constant 0 : i32
    return %arg0, %c0_i32 : i32, i32
  }
  func.func @transform_1(%arg0: i32) -> (i32, i32) {
    %c0_i32 = arith.constant 0 : i32
    %c0_i32_0 = arith.constant 0 : i32
    %c0_i32_1 = arith.constant 0 : i32
    return %c0_i32, %c0_i32_0 : i32, i32
  }
  func.func @transform_2(%arg0: i32) -> (i32, i32) {
    %c0_i32 = arith.constant 0 : i32
    %c0_i32_0 = arith.constant 0 : i32
    %c0_i32_1 = arith.constant 0 : i32
    return %c0_i32, %c0_i32_0 : i32, i32
  }
  func.func @transform_3(%arg0: i32) -> (i32, i32) {
    %c0_i32 = arith.constant 0 : i32
    %c0_i32_0 = arith.constant 0 : i32
    %c0_i32_1 = arith.constant 0 : i32
    return %c0_i32, %c0_i32_0 : i32, i32
  }
  func.func @transform_4(%arg0: i32) -> (i32, i32) {
    %c0_i32 = arith.constant 0 : i32
    %c0_i32_0 = arith.constant 0 : i32
    %c0_i32_1 = arith.constant 0 : i32
    return %c0_i32, %c0_i32_0 : i32, i32
  }
  func.func @transform_5(%arg0: i32) -> (i32, i32) {
    %c0_i32 = arith.constant 0 : i32
    %c0_i32_0 = arith.constant 0 : i32
    %c0_i32_1 = arith.constant 0 : i32
    return %c0_i32, %c0_i32_0 : i32, i32
  }
  func.func @transform_6(%arg0: i32) -> (i32, i32) {
    %c0_i32 = arith.constant 0 : i32
    %c0_i32_0 = arith.constant 0 : i32
    %c0_i32_1 = arith.constant 0 : i32
    return %c0_i32, %c0_i32_0 : i32, i32
  }
  func.func @transform_7(%arg0: i32) -> (i32, i32) {
    %c0_i32 = arith.constant 0 : i32
    %c0_i32_0 = arith.constant 0 : i32
    return %arg0, %c0_i32 : i32, i32
  }
}

</mosaic_0001>

<bundles_post_ra>
// kernel: moon_model_forward.1
= control target key start
LH: loop header
LB: loop body
LE: loop exit
PB: predicated region body
PF: predicated region fallthrough
CT: control target
= control target key end

     0   :  { %v906_v0 = vmov 1   ;;  %v907_v7 = vmov 0   ;;  %vm294_vm0 = vcmask 261120   ;;  %vm708_vm1 = vcmask 15360   ;;  %s1198_s0 = inlined_call_operand.vmem [shape: f32[128,2], index: 0, kind: input, shape index: {}]   ;;  %s1199_s3 = inlined_call_operand.vmem [shape: f32[32,32], index: 3, kind: input, shape index: {}]   ;;  %s1200_s5 = inlined_call_operand.vmem [shape: f32[32,2], index: 5, kind: input, shape index: {}]   ;;  %s1201_s1 = inlined_call_operand.vmem [shape: f32[2,32], index: 1, kind: input, shape index: {}]   ;;  %s1202_s2 = inlined_call_operand.vmem [shape: f32[1,32], index: 2, kind: input, shape index: {}]   ;;  %s1203_s4 = inlined_call_operand.vmem [shape: f32[1,32], index: 4, kind: input, shape index: {}]   ;;  %s1204_s6 = inlined_call_operand.vmem [shape: f32[1,2], index: 6, kind: input, shape index: {}]   ;;  %s1205_s7 = inlined_call_operand.vmem [shape: f32[128,2], index: 7, kind: output, shape index: {}]  }
   0x1   :  { %890 = vset.pattern.permute.xlu0 %v906_v0  ;;  %888 = vset.pattern.permute.xlu1 %v906_v0  ;;  %v28_v1 = vld [vmem:[%s1198_s0 + $0x10] sm:$0xff]  ;;  %v26_v2 = vld [vmem:[%s1198_s0] sm:$0xff]  ;;  %v27_v4 = vld [vmem:[%s1198_s0 + $0x8] sm:$0xff] }
   0x2   :  { %176 = vperm.xlu0 %890, %v28_v1   ;;  %168 = vperm.xlu1 %888, %v26_v2   ;;  %v32_v3 = vld [vmem:[%s1198_s0 + $0x30] sm:$0xff]  ;;  %v29_v6 = vld [vmem:[%s1198_s0 + $0x18] sm:$0xff]  ;;  %v283_v8 = vld [vmem:[%s1199_s3] sm:$0xff] }
   0x3   :  { %v36_v5 = vld [vmem:[%s1198_s0 + $0x50] sm:$0xff]  ;;  %v284_v9 = vld [vmem:[%s1199_s3 + $0x8] sm:$0xff]  ;;  %v30_v11 = vld [vmem:[%s1198_s0 + $0x20] sm:$0xff] }
   0x4   :  { %v870_v10 = vpack.c.bf16 %v284_v9, %v283_v8  ;;  %v285_v12 = vld [vmem:[%s1199_s3 + $0x10] sm:$0xff]  ;;  %v286_v13 = vld [vmem:[%s1199_s3 + $0x18] sm:$0xff]  ;;  %v31_v15 = vld [vmem:[%s1198_s0 + $0x28] sm:$0xff] }
   0x5   :  { %v874_v14 = vpack.c.bf16 %v286_v13, %v285_v12  ;;  %v35_v16 = vld [vmem:[%s1198_s0 + $0x48] sm:$0xff]  ;;  %v33_v17 = vld [vmem:[%s1198_s0 + $0x38] sm:$0xff]  ;;  %v34_v19 = vld [vmem:[%s1198_s0 + $0x40] sm:$0xff] }
   0x6   :  { %192 = vperm.xlu0 %890, %v32_v3   ;;  %172 = vperm.xlu1 %888, %v27_v4   ;;  %v39_v18 = vld [vmem:[%s1198_s0 + $0x68] sm:$0xff]  ;;  %v40_v20 = vld [vmem:[%s1198_s0 + $0x70] sm:$0xff]  ;;  %v37_v21 = vld [vmem:[%s1198_s0 + $0x58] sm:$0xff] }
   0x7   :  { %871 = vmatprep.subr.bf16.mxu0 %v870_v10  ;;  %v38_v22 = vld [vmem:[%s1198_s0 + $0x60] sm:$0xff]  ;;  %v41_v23 = vld [vmem:[%s1198_s0 + $0x78] sm:$0xff]  ;;  %v505_v25 = vld [vmem:[%s1200_s5 + $0x8] sm:$0xff] }
   0x8   :  { %873 = vmatpush3.bf16.msra.mxu0 %v870_v10  ;;  %v504_v24 = vld [vmem:[%s1200_s5] sm:$0xff] }
   0x9   :  { %875 = vmatprep.subr.bf16.mxu0 %v874_v14  ;;  %v878_v26 = vpack.c.bf16 %v505_v25, %v504_v24  ;;  %v1029_v33 = vld [vmem:[%s1201_s1 + $0x1] ss:$0 sm:$0xff]  ;;  %v1034_v34 = vld [vmem:[%s1201_s1] ss:$0 sm:$0xff] }
   0xa   :  { %208 = vperm.xlu0 %890, %v36_v5   ;;  %889 = vset.pattern.permute.xlu1 %v907_v7  ;;  %v1040_v38 = vld [vmem:[%s1202_s2] ss:$0 sm:$0xff] }
   0xb   :  { %61 = vperm.xlu1 %889, %v29_v6   ;;  %879 = vmatprep.subr.bf16.mxu1 %v878_v26 }
   0xc   :  { %877 = vmatpush3.bf16.msra.mxu0 %v874_v14  ;;  %881 = vmatpush3.bf16.msra.mxu1 %v878_v26 }
   0xe   :  { %899 = vset.pattern.permute.xlu0 %v907_v7 }
   0xf   :  { %46 = vperm.xlu0 %899, %v26_v2   ;;  %891 = vset.pattern.permute.xlu1 %v906_v0 }
  0x10   :  { %180 = vperm.xlu1 %891, %v29_v6  }
  0x13   :  { %51 = vperm.xlu0 %899, %v27_v4  }
  0x14   :  { %892 = vset.pattern.permute.xlu1 %v907_v7 }
  0x15   :  { %66 = vperm.xlu1 %892, %v30_v11  }
  0x17   :  { %56 = vperm.xlu0 %899, %v28_v1  }
  0x19   :  { %893 = vset.pattern.permute.xlu1 %v906_v0 }
  0x1a   :  { %184 = vperm.xlu1 %893, %v30_v11  }
  0x1b   :  { %71 = vperm.xlu0 %899, %v31_v15  }
  0x1e   :  { %188 = vperm.xlu1 %893, %v31_v15  }
  0x1f   :  { %76 = vperm.xlu0 %899, %v32_v3  }
  0x22   :  { %894 = vset.pattern.permute.xlu1 %v907_v7 }
  0x23   :  { %91 = vperm.xlu0 %899, %v35_v16   ;;  %81 = vperm.xlu1 %894, %v33_v17  }
  0x27   :  { %96 = vperm.xlu0 %899, %v36_v5   ;;  %895 = vset.pattern.permute.xlu1 %v906_v0 }
  0x28   :  { %196 = vperm.xlu1 %895, %v33_v17  }
  0x2b   :  { %111 = vperm.xlu0 %899, %v39_v18  }
  0x2c   :  { %896 = vset.pattern.permute.xlu1 %v907_v7 }
  0x2d   :  { %86 = vperm.xlu1 %896, %v34_v19  }
  0x2f   :  { %116 = vperm.xlu0 %899, %v40_v20  }
  0x31   :  { %897 = vset.pattern.permute.xlu1 %v906_v0 }
  0x32   :  { %200 = vperm.xlu1 %897, %v34_v19  }
  0x33   :  { %904 = vset.pattern.permute.xlu0 %v906_v0 }
  0x34   :  { %224 = vperm.xlu0 %904, %v40_v20  }
  0x36   :  { %204 = vperm.xlu1 %897, %v35_v16  }
  0x3a   :  { %898 = vset.pattern.permute.xlu1 %v907_v7 }
  0x3b   :  { %101 = vperm.xlu1 %898, %v37_v21  }
  0x3f   :  { %900 = vset.pattern.permute.xlu1 %v906_v0 }
  0x40   :  { %212 = vperm.xlu1 %900, %v37_v21  }
  0x44   :  { %901 = vset.pattern.permute.xlu1 %v907_v7 }
  0x45   :  { %106 = vperm.xlu1 %901, %v38_v22  }
  0x49   :  { %902 = vset.pattern.permute.xlu1 %v906_v0 }
  0x4a   :  { %216 = vperm.xlu1 %902, %v38_v22  }
  0x4e   :  { %220 = vperm.xlu1 %902, %v39_v18  }
  0x52   :  { %903 = vset.pattern.permute.xlu1 %v907_v7 }
  0x53   :  { %121 = vperm.xlu1 %903, %v41_v23  }
  0x57   :  { %905 = vset.pattern.permute.xlu1 %v906_v0 }
  0x58   :  { %228 = vperm.xlu1 %905, %v41_v23  }
  0x81   :  { %v169_v27 = vpop.permute.xlu1 %168  ;;  %v177_v28 = vpop.permute.xlu0 %176 }
  0x82   :  { %v235_v39 = vmul.f32 %v1029_v33, %v169_v27  ;;  %v237_v52 = vmul.f32 %v1029_v33, %v177_v28 }
  0x85   :  { %v173_v29 = vpop.permute.xlu1 %172  ;;  %v193_v30 = vpop.permute.xlu0 %192 }
  0x86   :  { %v236_v46 = vmul.f32 %v1029_v33, %v173_v29  ;;  %v241_v9 = vmul.f32 %v1029_v33, %v193_v30 }
  0x89   :  { %v1024_v31 = vpop.permute.xlu0 %208 }
  0x8a   :  { %v62_v32 = vpop.permute.xlu1 %61 }
  0x8b   :  { %v131_v44 = vmul.f32 %v1034_v34, %v62_v32 }
  0x8d   :  { %v153_v55 = vadd.f32 %v1040_v38, %v131_v44 }
  0x8e   :  { %v47_v35 = vpop.permute.xlu0 %46 }
  0x8f   :  { %v128_v36 = vmul.f32 %v1034_v34, %v47_v35  ;;  %v181_v37 = vpop.permute.xlu1 %180 }
  0x90   :  { %v238_v49 = vmul.f32 %v1029_v33, %v181_v37  ;;  %v245_v37 = vmul.f32 %v1029_v33, %v1024_v31 }
  0x91   :  { %v150_v40 = vadd.f32 %v1040_v38, %v128_v36 }
  0x92   :  { %v52_v41 = vpop.permute.xlu0 %51  ;;  %v254_v59 = vadd.f32 %v238_v49, %v153_v55 }
  0x93   :  { %v129_v42 = vmul.f32 %v1034_v34, %v52_v41  ;;  %v251_v43 = vadd.f32 %v235_v39, %v150_v40 }
  0x94   :  { %v67_v45 = vpop.permute.xlu1 %66  ;;  %v270_v5 = vmax.f32 %v254_v59, 0.0 }
  0x95   :  { %v151_v47 = vadd.f32 %v1040_v38, %v129_v42  ;;  %v267_v48 = vmax.f32 %v251_v43, 0.0  ;;  %v132_v50 = vmul.f32 %v1034_v34, %v67_v45 }
  0x96   :  { %v57_v51 = vpop.permute.xlu0 %56 }
  0x97   :  { %v252_v53 = vadd.f32 %v236_v46, %v151_v47  ;;  %v130_v54 = vmul.f32 %v1034_v34, %v57_v51  ;;  %814 = vmatprep.mubr.msk.f32.mxu0 %vm294_vm0, %v267_v48  ;;  %v154_v60 = vadd.f32 %v1040_v38, %v132_v50 }
  0x99   :  { %v268_v56 = vmax.f32 %v252_v53, 0.0  ;;  %v152_v57 = vadd.f32 %v1040_v38, %v130_v54  ;;  %v185_v58 = vpop.permute.xlu1 %184 }
  0x9a   :  { %v239_v61 = vmul.f32 %v1029_v33, %v185_v58  ;;  %v72_v62 = vpop.permute.xlu0 %71 }
  0x9b   :  { %v253_v63 = vadd.f32 %v237_v52, %v152_v57  ;;  %v133_v0 = vmul.f32 %v1034_v34, %v72_v62  ;;  %815 = vmatmul.mubr.msk.f32.vlgmr.msra.gmra.mrb[0].mxu0 %vm294_vm0, %v268_v56 }
  0x9c   :  { %v255_v1 = vadd.f32 %v239_v61, %v154_v60 }
  0x9d   :  { %v269_v2 = vmax.f32 %v253_v63, 0.0  ;;  %v155_v3 = vadd.f32 %v1040_v38, %v133_v0  ;;  %v189_v4 = vpop.permute.xlu1 %188 }
  0x9e   :  { %v271_v6 = vmax.f32 %v255_v1, 0.0  ;;  %v240_v7 = vmul.f32 %v1029_v33, %v189_v4  ;;  %v77_v8 = vpop.permute.xlu0 %76 }
  0x9f   :  { %v134_v10 = vmul.f32 %v1034_v34, %v77_v8  ;;  %817 = vmatprep.mubr.msk.f32.mxu0 %vm294_vm0, %v269_v2 }
  0xa0   :  { %v256_v11 = vadd.f32 %v240_v7, %v155_v3  ;;  %818 = vmatmul.mubr.msk.f32.gmra.mrb[2].mxu0 %vm294_vm0, %v270_v5 }
  0xa1   :  { %v156_v12 = vadd.f32 %v1040_v38, %v134_v10  ;;  %820 = vmatprep.mubr.msk.f32.mxu0 %vm294_vm0, %v271_v6 }
  0xa2   :  { %v272_v13 = vmax.f32 %v256_v11, 0.0  ;;  %v82_v14 = vpop.permute.xlu1 %81  ;;  %v92_v18 = vpop.permute.xlu0 %91 }
  0xa3   :  { %v257_v15 = vadd.f32 %v241_v9, %v156_v12  ;;  %v135_v16 = vmul.f32 %v1034_v34, %v82_v14  ;;  %v137_v29 = vmul.f32 %v1034_v34, %v92_v18 }
  0xa4   :  { %821 = vmatmul.mubr.msk.f32.gmra.mrb[4].mxu0 %vm294_vm0, %v272_v13 }
  0xa5   :  { %v273_v17 = vmax.f32 %v257_v15, 0.0  ;;  %v157_v20 = vadd.f32 %v1040_v38, %v135_v16  ;;  %v159_v40 = vadd.f32 %v1040_v38, %v137_v29 }
  0xa6   :  { %v97_v23 = vpop.permute.xlu0 %96 }
  0xa7   :  { %v197_v19 = vpop.permute.xlu1 %196  ;;  %823 = vmatprep.mubr.msk.f32.mxu0 %vm294_vm0, %v273_v17  ;;  %v138_v27 = vmul.f32 %v1034_v34, %v97_v23  ;;  %v506_v17 = vld [vmem:[%s1200_s5 + $0x10] sm:$0xff] }
  0xa8   :  { %v242_v21 = vmul.f32 %v1029_v33, %v197_v19 }
  0xa9   :  { %v160_v35 = vadd.f32 %v1040_v38, %v138_v27 }
  0xaa   :  { %v258_v22 = vadd.f32 %v242_v21, %v157_v20  ;;  %v112_v48 = vpop.permute.xlu0 %111 }
  0xab   :  { %v261_v43 = vadd.f32 %v245_v37, %v160_v35  ;;  %v141_v60 = vmul.f32 %v1034_v34, %v112_v48 }
  0xac   :  { %v274_v24 = vmax.f32 %v258_v22, 0.0  ;;  %v87_v25 = vpop.permute.xlu1 %86 }
  0xad   :  { %v136_v26 = vmul.f32 %v1034_v34, %v87_v25  ;;  %v277_v47 = vmax.f32 %v261_v43, 0.0  ;;  %v163_v3 = vadd.f32 %v1040_v38, %v141_v60 }
  0xae   :  { %824 = vmatmul.mubr.msk.f32.gmra.mrb[6].mxu0 %vm294_vm0, %v274_v24  ;;  %v117_v52 = vpop.permute.xlu0 %116 }
  0xaf   :  { %v158_v30 = vadd.f32 %v1040_v38, %v136_v26  ;;  %v142_v57 = vmul.f32 %v1034_v34, %v117_v52 }
  0xb1   :  { %v201_v28 = vpop.permute.xlu1 %200  ;;  %v164_v63 = vadd.f32 %v1040_v38, %v142_v57 }
  0xb2   :  { %v243_v32 = vmul.f32 %v1029_v33, %v201_v28 }
  0xb3   :  { %v225_v58 = vpop.permute.xlu0 %224 }
  0xb4   :  { %v259_v36 = vadd.f32 %v243_v32, %v158_v30  ;;  %v249_v0 = vmul.f32 %v1029_v33, %v225_v58 }
  0xb5   :  { %v205_v39 = vpop.permute.xlu1 %204 }
  0xb6   :  { %v275_v41 = vmax.f32 %v259_v36, 0.0  ;;  %v244_v42 = vmul.f32 %v1029_v33, %v205_v39  ;;  %v265_v6 = vadd.f32 %v249_v0, %v164_v63 }
  0xb8   :  { %v260_v44 = vadd.f32 %v244_v42, %v159_v40  ;;  %826 = vmatprep.mubr.msk.f32.mxu0 %vm294_vm0, %v275_v41  ;;  %v281_v10 = vmax.f32 %v265_v6, 0.0 }
  0xba   :  { %v276_v45 = vmax.f32 %v260_v44, 0.0  ;;  %v102_v46 = vpop.permute.xlu1 %101 }
  0xbb   :  { %v139_v49 = vmul.f32 %v1034_v34, %v102_v46 }
  0xbc   :  { %827 = vmatmul.mubr.msk.f32.gmra.mrb[8].mxu0 %vm294_vm0, %v276_v45 }
  0xbd   :  { %829 = vmatprep.mubr.msk.f32.mxu0 %vm294_vm0, %v277_v47  ;;  %v161_v50 = vadd.f32 %v1040_v38, %v139_v49 }
  0xbf   :  { %v213_v31 = vpop.permute.xlu1 %212 }
  0xc0   :  { %v246_v51 = vmul.f32 %v1029_v33, %v213_v31 }
  0xc2   :  { %v262_v53 = vadd.f32 %v246_v51, %v161_v50 }
  0xc4   :  { %v278_v54 = vmax.f32 %v262_v53, 0.0  ;;  %v107_v55 = vpop.permute.xlu1 %106 }
  0xc5   :  { %v140_v56 = vmul.f32 %v1034_v34, %v107_v55 }
  0xc6   :  { %830 = vmatmul.mubr.msk.f32.gmra.mrb[10].mxu0 %vm294_vm0, %v278_v54 }
  0xc7   :  { %v162_v61 = vadd.f32 %v1040_v38, %v140_v56 }
  0xc9   :  { %v217_v59 = vpop.permute.xlu1 %216 }
  0xca   :  { %v247_v62 = vmul.f32 %v1029_v33, %v217_v59 }
  0xcc   :  { %v263_v1 = vadd.f32 %v247_v62, %v162_v61 }
  0xcd   :  { %v221_v2 = vpop.permute.xlu1 %220 }
  0xce   :  { %v279_v4 = vmax.f32 %v263_v1, 0.0  ;;  %v248_v5 = vmul.f32 %v1029_v33, %v221_v2 }
  0xd0   :  { %v264_v7 = vadd.f32 %v248_v5, %v163_v3  ;;  %832 = vmatprep.mubr.msk.f32.mxu0 %vm294_vm0, %v279_v4  ;;  %v749_v5 = vld [vmem:[%s1204_s6] ss:$0 sm:$0xff] }
  0xd2   :  { %v280_v8 = vmax.f32 %v264_v7, 0.0  ;;  %v122_v9 = vpop.permute.xlu1 %121 }
  0xd3   :  { %v143_v11 = vmul.f32 %v1034_v34, %v122_v9  ;;  %v507_v34 = vld [vmem:[%s1200_s5 + $0x18] sm:$0xff] }
  0xd4   :  { %833 = vmatmul.mubr.msk.f32.gmra.mrb[12].mxu0 %vm294_vm0, %v280_v8  ;;  %v882_v18 = vpack.c.bf16 %v507_v34, %v506_v17 }
  0xd5   :  { %835 = vmatprep.mubr.msk.f32.mxu0 %vm294_vm0, %v281_v10  ;;  %v165_v13 = vadd.f32 %v1040_v38, %v143_v11  ;;  %v732_v38 = vld [vmem:[%s1203_s4] ss:$0 sm:$0xff] }
  0xd6   :  { %883 = vmatprep.subr.bf16.mxu1 %v882_v18 }
  0xd7   :  { %v229_v12 = vpop.permute.xlu1 %228  ;;  %885 = vmatpush3.bf16.msra.mxu1 %v882_v18 }
  0xd8   :  { %v250_v14 = vmul.f32 %v1029_v33, %v229_v12 }
  0xda   :  { %v266_v15 = vadd.f32 %v250_v14, %v165_v13 }
  0xdc   :  { %v282_v16 = vmax.f32 %v266_v15, 0.0 }
  0xde   :  { %836 = vmatmul.mubr.msk.f32.gmra.mrb[14].mxu0 %vm294_vm0, %v282_v16 }
 0x16e   :  { %v816_v33 = vpop.f32.mrb[0].mxu0 }
 0x16f   :  { %v415_v19 = vadd.f32 %v816_v33, %v732_v38  ;;  %v409_v20 = vpop.f32.mrb[1].mxu0 }
 0x170   :  { %v410_v21 = vadd.f32 %v732_v38, %v409_v20 }
 0x171   :  { %v489_v23 = vmax.f32 %v415_v19, 0.0 }
 0x172   :  { %v488_v22 = vmax.f32 %v410_v21, 0.0 }
 0x173   :  { %v819_v24 = vpop.f32.mrb[2].mxu0 }
 0x174   :  { %v425_v25 = vadd.f32 %v819_v24, %v732_v38  ;;  %v419_v26 = vpop.f32.mrb[3].mxu0  ;;  %846 = vmatprep.mubr.msk.f32.mxu1 %vm294_vm0, %v488_v22 }
 0x175   :  { %v420_v27 = vadd.f32 %v732_v38, %v419_v26  ;;  %847 = vmatmul.mubr.msk.f32.vlgmr.msra.gmra.mrb[0].mxu1 %vm294_vm0, %v489_v23 }
 0x176   :  { %v491_v30 = vmax.f32 %v425_v25, 0.0 }
 0x177   :  { %v490_v28 = vmax.f32 %v420_v27, 0.0  ;;  %v822_v29 = vpop.f32.mrb[4].mxu0 }
 0x178   :  { %v435_v32 = vadd.f32 %v822_v29, %v732_v38  ;;  %v429_v35 = vpop.f32.mrb[5].mxu0 }
 0x179   :  { %v430_v36 = vadd.f32 %v732_v38, %v429_v35  ;;  %849 = vmatprep.mubr.msk.f32.mxu1 %vm294_vm0, %v490_v28 }
 0x17a   :  { %850 = vmatmul.mubr.msk.f32.gmra.mrb[2].mxu1 %vm294_vm0, %v491_v30  ;;  %v493_v39 = vmax.f32 %v435_v32, 0.0 }
 0x17b   :  { %v492_v37 = vmax.f32 %v430_v36, 0.0 }
 0x17d   :  { %852 = vmatprep.mubr.msk.f32.mxu1 %vm294_vm0, %v492_v37 }
 0x17e   :  { %853 = vmatmul.mubr.msk.f32.gmra.mrb[4].mxu1 %vm294_vm0, %v493_v39 }
 0x181   :  { %v825_v40 = vpop.f32.mrb[6].mxu0 }
 0x182   :  { %v445_v41 = vadd.f32 %v825_v40, %v732_v38  ;;  %v439_v42 = vpop.f32.mrb[7].mxu0 }
 0x183   :  { %v440_v43 = vadd.f32 %v732_v38, %v439_v42 }
 0x184   :  { %v495_v45 = vmax.f32 %v445_v41, 0.0 }
 0x185   :  { %v494_v44 = vmax.f32 %v440_v43, 0.0 }
 0x187   :  { %855 = vmatprep.mubr.msk.f32.mxu1 %vm294_vm0, %v494_v44 }
 0x188   :  { %856 = vmatmul.mubr.msk.f32.gmra.mrb[6].mxu1 %vm294_vm0, %v495_v45 }
 0x18f   :  { %v828_v46 = vpop.f32.mrb[8].mxu0 }
 0x190   :  { %v455_v47 = vadd.f32 %v828_v46, %v732_v38  ;;  %v449_v48 = vpop.f32.mrb[9].mxu0 }
 0x191   :  { %v450_v49 = vadd.f32 %v732_v38, %v449_v48 }
 0x192   :  { %v497_v50 = vmax.f32 %v455_v47, 0.0 }
 0x193   :  { %v496_v31 = vmax.f32 %v450_v49, 0.0 }
 0x195   :  { %858 = vmatprep.mubr.msk.f32.mxu1 %vm294_vm0, %v496_v31 }
 0x196   :  { %859 = vmatmul.mubr.msk.f32.gmra.mrb[8].mxu1 %vm294_vm0, %v497_v50 }
 0x199   :  { %v831_v51 = vpop.f32.mrb[10].mxu0 }
 0x19a   :  { %v465_v52 = vadd.f32 %v831_v51, %v732_v38  ;;  %v459_v53 = vpop.f32.mrb[11].mxu0 }
 0x19b   :  { %v460_v54 = vadd.f32 %v732_v38, %v459_v53 }
 0x19c   :  { %v499_v56 = vmax.f32 %v465_v52, 0.0 }
 0x19d   :  { %v498_v55 = vmax.f32 %v460_v54, 0.0 }
 0x19f   :  { %861 = vmatprep.mubr.msk.f32.mxu1 %vm294_vm0, %v498_v55 }
 0x1a0   :  { %862 = vmatmul.mubr.msk.f32.gmra.mrb[10].mxu1 %vm294_vm0, %v499_v56 }
 0x1a7   :  { %v834_v57 = vpop.f32.mrb[12].mxu0 }
 0x1a8   :  { %v475_v58 = vadd.f32 %v834_v57, %v732_v38  ;;  %v469_v59 = vpop.f32.mrb[13].mxu0 }
 0x1a9   :  { %v470_v60 = vadd.f32 %v732_v38, %v469_v59 }
 0x1aa   :  { %v501_v62 = vmax.f32 %v475_v58, 0.0 }
 0x1ab   :  { %v500_v61 = vmax.f32 %v470_v60, 0.0 }
 0x1ad   :  { %864 = vmatprep.mubr.msk.f32.mxu1 %vm294_vm0, %v500_v61 }
 0x1ae   :  { %865 = vmatmul.mubr.msk.f32.gmra.mrb[12].mxu1 %vm294_vm0, %v501_v62 }
 0x1b1   :  { %v837_v63 = vpop.f32.mrb[14].mxu0 }
 0x1b2   :  { %v485_v0 = vadd.f32 %v837_v63, %v732_v38  ;;  %v479_v1 = vpop.f32.mrb[15].mxu0 }
 0x1b3   :  { %v480_v2 = vadd.f32 %v732_v38, %v479_v1 }
 0x1b4   :  { %v503_v4 = vmax.f32 %v485_v0, 0.0 }
 0x1b5   :  { %v502_v3 = vmax.f32 %v480_v2, 0.0 }
 0x1b7   :  { %867 = vmatprep.mubr.msk.f32.mxu1 %vm294_vm0, %v502_v3 }
 0x1b8   :  { %868 = vmatmul.mubr.msk.f32.gmra.mrb[14].mxu1 %vm294_vm0, %v503_v4 }
 0x248   :  { %v848_v6 = vpop.f32.mrb[0].mxu1 }
 0x249   :  { %v635_v7 = vadd.f32 %v848_v6, %v749_v5  ;;  %v629_v8 = vpop.f32.mrb[1].mxu1 }
 0x24a   :  { %v630_v9 = vadd.f32 %v749_v5, %v629_v8 }
 0x24b   :  { %710 = vst.msk [vmem:[%s1205_s7 + $0x8] sm:$0xff] %vm708_vm1, %v635_v7 }
 0x24c   :  { %709 = vst.msk [vmem:[%s1205_s7] sm:$0xff] %vm708_vm1, %v630_v9 }
 0x24d   :  { %v851_v10 = vpop.f32.mrb[2].mxu1 }
 0x24e   :  { %v645_v11 = vadd.f32 %v851_v10, %v749_v5  ;;  %v639_v12 = vpop.f32.mrb[3].mxu1 }
 0x24f   :  { %v640_v13 = vadd.f32 %v749_v5, %v639_v12 }
 0x250   :  { %712 = vst.msk [vmem:[%s1205_s7 + $0x18] sm:$0xff] %vm708_vm1, %v645_v11 }
 0x251   :  { %711 = vst.msk [vmem:[%s1205_s7 + $0x10] sm:$0xff] %vm708_vm1, %v640_v13  ;;  %v854_v14 = vpop.f32.mrb[4].mxu1 }
 0x252   :  { %v655_v15 = vadd.f32 %v854_v14, %v749_v5  ;;  %v649_v16 = vpop.f32.mrb[5].mxu1 }
 0x253   :  { %v650_v17 = vadd.f32 %v749_v5, %v649_v16 }
 0x254   :  { %714 = vst.msk [vmem:[%s1205_s7 + $0x28] sm:$0xff] %vm708_vm1, %v655_v15 }
 0x255   :  { %713 = vst.msk [vmem:[%s1205_s7 + $0x20] sm:$0xff] %vm708_vm1, %v650_v17 }
 0x25b   :  { %v857_v34 = vpop.f32.mrb[6].mxu1 }
 0x25c   :  { %v665_v18 = vadd.f32 %v857_v34, %v749_v5  ;;  %v659_v38 = vpop.f32.mrb[7].mxu1 }
 0x25d   :  { %v660_v33 = vadd.f32 %v749_v5, %v659_v38 }
 0x25e   :  { %716 = vst.msk [vmem:[%s1205_s7 + $0x38] sm:$0xff] %vm708_vm1, %v665_v18 }
 0x25f   :  { %715 = vst.msk [vmem:[%s1205_s7 + $0x30] sm:$0xff] %vm708_vm1, %v660_v33 }
 0x269   :  { %v860_v19 = vpop.f32.mrb[8].mxu1 }
 0x26a   :  { %v675_v20 = vadd.f32 %v860_v19, %v749_v5  ;;  %v669_v21 = vpop.f32.mrb[9].mxu1 }
 0x26b   :  { %v670_v22 = vadd.f32 %v749_v5, %v669_v21 }
 0x26c   :  { %718 = vst.msk [vmem:[%s1205_s7 + $0x48] sm:$0xff] %vm708_vm1, %v675_v20 }
 0x26d   :  { %717 = vst.msk [vmem:[%s1205_s7 + $0x40] sm:$0xff] %vm708_vm1, %v670_v22 }
 0x273   :  { %v863_v23 = vpop.f32.mrb[10].mxu1 }
 0x274   :  { %v685_v24 = vadd.f32 %v863_v23, %v749_v5  ;;  %v679_v25 = vpop.f32.mrb[11].mxu1 }
 0x275   :  { %v680_v26 = vadd.f32 %v749_v5, %v679_v25 }
 0x276   :  { %720 = vst.msk [vmem:[%s1205_s7 + $0x58] sm:$0xff] %vm708_vm1, %v685_v24 }
 0x277   :  { %719 = vst.msk [vmem:[%s1205_s7 + $0x50] sm:$0xff] %vm708_vm1, %v680_v26 }
 0x281   :  { %v866_v27 = vpop.f32.mrb[12].mxu1 }
 0x282   :  { %v695_v28 = vadd.f32 %v866_v27, %v749_v5  ;;  %v689_v29 = vpop.f32.mrb[13].mxu1 }
 0x283   :  { %v690_v30 = vadd.f32 %v749_v5, %v689_v29 }
 0x284   :  { %722 = vst.msk [vmem:[%s1205_s7 + $0x68] sm:$0xff] %vm708_vm1, %v695_v28 }
 0x285   :  { %721 = vst.msk [vmem:[%s1205_s7 + $0x60] sm:$0xff] %vm708_vm1, %v690_v30 }
 0x28b   :  { %v869_v32 = vpop.f32.mrb[14].mxu1 }
 0x28c   :  { %v705_v35 = vadd.f32 %v869_v32, %v749_v5  ;;  %v699_v36 = vpop.f32.mrb[15].mxu1 }
 0x28d   :  { %v700_v37 = vadd.f32 %v749_v5, %v699_v36 }
 0x28e   :  { %724 = vst.msk [vmem:[%s1205_s7 + $0x78] sm:$0xff] %vm708_vm1, %v705_v35 }
 0x28f   :  { %723 = vst.msk [vmem:[%s1205_s7 + $0x70] sm:$0xff] %vm708_vm1, %v700_v37 }

</bundles_post_ra>
